<compile_context>
chip_gen: v5e
topology: v5e:2x2
jax: 0.10.0
libtpu: 0.0.40
codegen_flags: <defaults>
</compile_context>

<pallas_src>
import functools

import jax
import jax.numpy as jnp
from jax.experimental import pallas as pl
from jax.experimental.pallas import tpu as pltpu


def _layer_norm(v, gamma, beta, eps=1e-5):
    mu = jnp.mean(v, axis=-1, keepdims=True)
    var = jnp.mean((v - mu) ** 2, axis=-1, keepdims=True)
    return (v - mu) * jax.lax.rsqrt(var + eps) * gamma + beta


def _encoder_block_kernel(h,  # static number of heads (closed over)
                          x_ref,
                          wqkv_ref, bqkv_ref, wo_ref,
                          w1_ref, b1_ref, w2_ref,
                          vecd_ref,           # (6, D): bo | b2 | g1 | be1 | g2 | be2
                          o_ref):
    x = x_ref[0]                              # (S, D), f32
    S, D = x.shape
    d_k = D // h
    scale = 1.0 / (d_k ** 0.5)
    mm_dtype = wqkv_ref.dtype                 # MXU feed dtype (f32 or bf16)

    # Hoist the packed (1, D) parameter rows once (cheap sublane views).
    bo = vecd_ref[0:1, :]
    b2 = vecd_ref[1:2, :]
    g1 = vecd_ref[2:3, :]
    be1 = vecd_ref[3:4, :]
    g2 = vecd_ref[4:5, :]
    be2 = vecd_ref[5:6, :]

    # ---- fused QKV projection: one MXU pass with N = 3*D -----------------
    qkv = jnp.dot(x.astype(mm_dtype), wqkv_ref[...],
                  preferred_element_type=jnp.float32) + bqkv_ref[...]     # (S, 3D)
    q = qkv[:, 0:D] * scale                   # fold 1/sqrt(d_k) into q
    k = qkv[:, D:2 * D]
    v = qkv[:, 2 * D:3 * D]

    # ---- batched multi-head attention (no per-head loop, no concat) ------
    qh = q.reshape(S, h, d_k).transpose(1, 0, 2)      # (h, S, d_k)
    kh = k.reshape(S, h, d_k).transpose(1, 0, 2)
    vh = v.reshape(S, h, d_k).transpose(1, 0, 2)

    s = jnp.einsum("hqd,hkd->hqk", qh.astype(mm_dtype), kh.astype(mm_dtype),
                   preferred_element_type=jnp.float32)                    # (h, S, S)
    m = jnp.max(s, axis=-1, keepdims=True)
    e = jnp.exp(s - m)
    # Normalize via approximate reciprocal on the (otherwise idle) EUP slot.
    p = e * pl.reciprocal(jnp.sum(e, axis=-1, keepdims=True), approx=True)
    ctx = jnp.einsum("hqk,hkd->hqd", p.astype(mm_dtype), vh.astype(mm_dtype),
                     preferred_element_type=jnp.float32)                  # (h, S, d_k)
    ctx = ctx.transpose(1, 0, 2).reshape(S, D)        # concat heads along features

    attn_out = jnp.dot(ctx.astype(mm_dtype), wo_ref[...],
                       preferred_element_type=jnp.float32) + bo

    # Dropout is identity in eval mode.
    # TODO(synk): dropout is treated as eval-mode identity (no RNG mask).
    x1 = _layer_norm(x + attn_out, g1, be1)

    # ---- position-wise feed-forward ---------------------------------------
    ff = jnp.dot(x1.astype(mm_dtype), w1_ref[...],
                 preferred_element_type=jnp.float32) + b1_ref[...]
    ff = jnp.maximum(ff, 0.0)
    ff = jnp.dot(ff.astype(mm_dtype), w2_ref[...],
                 preferred_element_type=jnp.float32) + b2

    x2 = _layer_norm(x1 + ff, g2, be2)
    o_ref[0] = x2.astype(o_ref.dtype)


def _vmem_limit_bytes(S, D, F, h, w_itemsize):
    """Scoped-VMEM budget from the actual working set (+ headroom)."""
    weights = (D * 3 * D + D * D + D * F + F * D) * w_itemsize     # matmul weights
    vectors = (3 * D + F + 6 * D) * 4                              # packed bias/LN
    io_tiles = 2 * (S * D * 4)                                     # x tile + out tile
    inter = (S * 3 * D + h * S * S + 4 * S * D + S * F) * 4        # live intermediates
    need = 2 * (weights + vectors + io_tiles) + inter + (8 << 20)  # x2 double-buffer
    # Clamp into a range that is legal on every generation (v7x has 64 MiB VMEM).
    return int(min(max(need, 32 << 20), 64 << 20))


def encoder_block(x, params, h, *, use_bf16_matmul=False):
    B, S, D = x.shape
    F = params["w1"].shape[1]
    assert D % h == 0, "d_model must be divisible by number of heads"
    # NOTE: for production shapes S and D should be multiples of (8, 128);
    # full-extent blocks make the small test shapes legal as-is.

    w_dtype = jnp.bfloat16 if use_bf16_matmul else jnp.float32
    # Fused QKV weight / bias.
    wqkv = jnp.concatenate([params["wq"], params["wk"], params["wv"]],
                           axis=1).astype(w_dtype)                     # (D, 3D)
    bqkv = jnp.concatenate([params["bq"], params["bk"], params["bv"]]
                           ).reshape(1, 3 * D)                         # (1, 3D)
    wo = params["wo"].astype(w_dtype)
    w1 = params["w1"].astype(w_dtype)
    b1 = params["b1"].reshape(1, F)
    w2 = params["w2"].astype(w_dtype)
    # Pack every (D,) vector into one 2-D buffer: one DMA, clean lane layout.
    vecd = jnp.stack([params["bo"], params["b2"],
                      params["g1"], params["be1"],
                      params["g2"], params["be2"]], axis=0)            # (6, D)

    def const2(r, c):
        # Same block for every grid step -> stays resident in VMEM (no re-DMA).
        return pl.BlockSpec((r, c), lambda b: (0, 0))

    in_specs = [
        pl.BlockSpec((1, S, D), lambda b: (b, 0, 0)),   # x
        const2(D, 3 * D),                               # wqkv
        const2(1, 3 * D),                               # bqkv
        const2(D, D),                                   # wo
        const2(D, F),                                   # w1
        const2(1, F),                                   # b1
        const2(F, D),                                   # w2
        const2(6, D),                                   # packed bo|b2|g1|be1|g2|be2
    ]

    kernel = functools.partial(_encoder_block_kernel, h)

    return pl.pallas_call(
        kernel,
        out_shape=jax.ShapeDtypeStruct((B, S, D), x.dtype),
        grid=(B,),
        in_specs=in_specs,
        out_specs=pl.BlockSpec((1, S, D), lambda b: (b, 0, 0)),
        compiler_params=pltpu.CompilerParams(
            dimension_semantics=("parallel",),
            vmem_limit_bytes=_vmem_limit_bytes(
                S, D, F, h, 2 if use_bf16_matmul else 4)),
    )(x, wqkv, bqkv, wo, w1, b1, w2, vecd)


def encoder_block_ref(x, params, h):
    """Plain-JAX reference with identical math (for correctness check)."""
    B, S, D = x.shape
    d_k = D // h
    q = x @ params["wq"] + params["bq"]
    k = x @ params["wk"] + params["bk"]
    v = x @ params["wv"] + params["bv"]
    qh = q.reshape(B, S, h, d_k).transpose(0, 2, 1, 3)
    kh = k.reshape(B, S, h, d_k).transpose(0, 2, 1, 3)
    vh = v.reshape(B, S, h, d_k).transpose(0, 2, 1, 3)
    scores = jnp.einsum("bhqd,bhkd->bhqk", qh, kh) / (d_k ** 0.5)
    attn = jax.nn.softmax(scores, axis=-1)
    out = jnp.einsum("bhqk,bhkd->bhqd", attn, vh)
    out = out.transpose(0, 2, 1, 3).reshape(B, S, D)
    out = out @ params["wo"] + params["bo"]

    def ln(v, g, b, eps=1e-5):
        mu = jnp.mean(v, -1, keepdims=True)
        var = jnp.mean((v - mu) ** 2, -1, keepdims=True)
        return (v - mu) / jnp.sqrt(var + eps) * g + b

    x1 = ln(x + out, params["g1"], params["be1"])
    ff = jnp.maximum(x1 @ params["w1"] + params["b1"], 0.0) @ params["w2"] + params["b2"]
    return ln(x1 + ff, params["g2"], params["be2"])


def make_params(key, d_model, d_ff):
    ks = jax.random.split(key, 12)
    s = 0.05
    return {
        "wq": jax.random.normal(ks[0], (d_model, d_model), jnp.float32) * s,
        "bq": jax.random.normal(ks[1], (d_model,), jnp.float32) * s,
        "wk": jax.random.normal(ks[2], (d_model, d_model), jnp.float32) * s,
        "bk": jax.random.normal(ks[3], (d_model,), jnp.float32) * s,
        "wv": jax.random.normal(ks[4], (d_model, d_model), jnp.float32) * s,
        "bv": jax.random.normal(ks[5], (d_model,), jnp.float32) * s,
        "wo": jax.random.normal(ks[6], (d_model, d_model), jnp.float32) * s,
        "bo": jax.random.normal(ks[7], (d_model,), jnp.float32) * s,
        "w1": jax.random.normal(ks[8], (d_model, d_ff), jnp.float32) * s,
        "b1": jax.random.normal(ks[9], (d_ff,), jnp.float32) * s,
        "w2": jax.random.normal(ks[10], (d_ff, d_model), jnp.float32) * s,
        "b2": jax.random.normal(ks[11], (d_model,), jnp.float32) * s,
        "g1": jnp.ones((d_model,), jnp.float32),
        "be1": jnp.zeros((d_model,), jnp.float32),
        "g2": jnp.ones((d_model,), jnp.float32),
        "be2": jnp.zeros((d_model,), jnp.float32),
    }


if __name__ == "__main__":
    # Small shapes consistent with (Batch, seq_len, d_model)
    B, S, d_model, h, d_ff = 2, 8, 32, 4, 64
    key = jax.random.PRNGKey(0)
    kx, kp = jax.random.split(key)
    x = jax.random.normal(kx, (B, S, d_model), jnp.float32)
    params = make_params(kp, d_model, d_ff)

    ref = encoder_block_ref(x, params, h)

    # Default f32 MXU-feed path (tight tolerance; approx reciprocal only).
    out = jax.block_until_ready(encoder_block(x, params, h))
    assert out.shape == (B, S, d_model)
    assert jnp.allclose(out, ref, atol=5e-3, rtol=5e-3), "f32 kernel mismatch vs reference"

    # bf16 MXU-feed path (v5e/v6e/v7x matmul speedup); looser tolerance.
    out_bf16 = jax.block_until_ready(encoder_block(x, params, h, use_bf16_matmul=True))
    assert jnp.allclose(out_bf16, ref, atol=1e-1, rtol=1e-1), "bf16 kernel mismatch vs reference"

    print("KERNEL_OK")
</pallas_src>

<mosaic_0001>
module attributes {stable_mosaic.version = 11 : i64} {
  func.func @_encoder_block_kernel(%arg0: i32, %arg1: memref<1x8x32xf32, #tpu.memory_space<vmem>>, %arg2: memref<32x96xf32, #tpu.memory_space<vmem>>, %arg3: memref<1x96xf32, #tpu.memory_space<vmem>>, %arg4: memref<32x32xf32, #tpu.memory_space<vmem>>, %arg5: memref<32x64xf32, #tpu.memory_space<vmem>>, %arg6: memref<1x64xf32, #tpu.memory_space<vmem>>, %arg7: memref<64x32xf32, #tpu.memory_space<vmem>>, %arg8: memref<6x32xf32, #tpu.memory_space<vmem>>, %arg9: memref<1x8x32xf32, #tpu.memory_space<vmem>>) attributes {dimension_semantics = [#tpu.dimension_semantics<parallel>], iteration_bounds = array<i64: 2>, scalar_prefetch = 0 : i64, scratch_operands = 0 : i64, tpu.core_type = #tpu.core_type<tc>, window_params = [{transform_indices = @transform_0, window_bounds = array<i64: 1, 8, 32>}, {pipeline_mode = #tpu.pipeline_mode<synchronous>, transform_indices = @transform_1, window_bounds = array<i64: 32, 96>}, {pipeline_mode = #tpu.pipeline_mode<synchronous>, transform_indices = @transform_2, window_bounds = array<i64: 1, 96>}, {pipeline_mode = #tpu.pipeline_mode<synchronous>, transform_indices = @transform_3, window_bounds = array<i64: 32, 32>}, {pipeline_mode = #tpu.pipeline_mode<synchronous>, transform_indices = @transform_4, window_bounds = array<i64: 32, 64>}, {pipeline_mode = #tpu.pipeline_mode<synchronous>, transform_indices = @transform_5, window_bounds = array<i64: 1, 64>}, {pipeline_mode = #tpu.pipeline_mode<synchronous>, transform_indices = @transform_6, window_bounds = array<i64: 64, 32>}, {pipeline_mode = #tpu.pipeline_mode<synchronous>, transform_indices = @transform_7, window_bounds = array<i64: 6, 32>}, {transform_indices = @transform_8, window_bounds = array<i64: 1, 8, 32>}]} {
    %c0 = arith.constant 0 : index
    %c0_0 = arith.constant 0 : index
    %c0_1 = arith.constant 0 : index
    %0 = vector.load %arg1[%c0, %c0_0, %c0_1] : memref<1x8x32xf32, #tpu.memory_space<vmem>>, vector<1x8x32xf32>
    %1 = vector.shape_cast %0 : vector<1x8x32xf32> to vector<8x32xf32>
    %c0_2 = arith.constant 0 : index
    %c0_3 = arith.constant 0 : index
    %2 = vector.load %arg8[%c0_2, %c0_3] : memref<6x32xf32, #tpu.memory_space<vmem>>, vector<1x32xf32>
    %c1 = arith.constant 1 : index
    %c0_4 = arith.constant 0 : index
    %3 = vector.load %arg8[%c1, %c0_4] : memref<6x32xf32, #tpu.memory_space<vmem>>, vector<1x32xf32>
    %c2 = arith.constant 2 : index
    %c0_5 = arith.constant 0 : index
    %4 = vector.load %arg8[%c2, %c0_5] : memref<6x32xf32, #tpu.memory_space<vmem>>, vector<1x32xf32>
    %c3 = arith.constant 3 : index
    %c0_6 = arith.constant 0 : index
    %5 = vector.load %arg8[%c3, %c0_6] : memref<6x32xf32, #tpu.memory_space<vmem>>, vector<1x32xf32>
    %c4 = arith.constant 4 : index
    %c0_7 = arith.constant 0 : index
    %6 = vector.load %arg8[%c4, %c0_7] : memref<6x32xf32, #tpu.memory_space<vmem>>, vector<1x32xf32>
    %c5 = arith.constant 5 : index
    %c0_8 = arith.constant 0 : index
    %7 = vector.load %arg8[%c5, %c0_8] : memref<6x32xf32, #tpu.memory_space<vmem>>, vector<1x32xf32>
    %c0_9 = arith.constant 0 : index
    %c0_10 = arith.constant 0 : index
    %8 = vector.load %arg2[%c0_9, %c0_10] : memref<32x96xf32, #tpu.memory_space<vmem>>, vector<32x96xf32>
    %cst = arith.constant dense<0.000000e+00> : vector<8x96xf32>
    %9 = tpu.matmul %1, %8, %cst {dimension_numbers = #tpu.dot_dimension_numbers<[1], [0], [0], [1], [0, 0, 1, 1], [], []>} : vector<8x32xf32>, vector<32x96xf32>, vector<8x96xf32> -> vector<8x96xf32>
    %c0_11 = arith.constant 0 : index
    %c0_12 = arith.constant 0 : index
    %10 = vector.load %arg3[%c0_11, %c0_12] : memref<1x96xf32, #tpu.memory_space<vmem>>, vector<1x96xf32>
    %11 = vector.broadcast %10 : vector<1x96xf32> to vector<8x96xf32>
    %12 = arith.addf %9, %11 : vector<8x96xf32>
    %13 = vector.extract_strided_slice %12 {offsets = [0, 0], sizes = [8, 32], strides = [1, 1]} : vector<8x96xf32> to vector<8x32xf32>
    %cst_13 = arith.constant 0.353553385 : f32
    %14 = vector.broadcast %cst_13 : f32 to vector<8x32xf32>
    %15 = arith.mulf %13, %14 : vector<8x32xf32>
    %16 = vector.extract_strided_slice %12 {offsets = [0, 32], sizes = [8, 32], strides = [1, 1]} : vector<8x96xf32> to vector<8x32xf32>
    %17 = vector.extract_strided_slice %12 {offsets = [0, 64], sizes = [8, 32], strides = [1, 1]} : vector<8x96xf32> to vector<8x32xf32>
    %18 = vector.shape_cast %15 : vector<8x32xf32> to vector<8x4x8xf32>
    %19 = tpu.transpose %18, [1, 0, 2] : vector<8x4x8xf32> -> vector<4x8x8xf32>
    %20 = vector.shape_cast %16 : vector<8x32xf32> to vector<8x4x8xf32>
    %21 = tpu.transpose %20, [1, 0, 2] : vector<8x4x8xf32> -> vector<4x8x8xf32>
    %22 = vector.shape_cast %17 : vector<8x32xf32> to vector<8x4x8xf32>
    %23 = tpu.transpose %22, [1, 0, 2] : vector<8x4x8xf32> -> vector<4x8x8xf32>
    "tpu.trace_start"() <{level = 10 : i32, message = "hqd,hkd->hqk"}> : () -> ()
    %cst_14 = arith.constant dense<0.000000e+00> : vector<4x8x8xf32>
    %24 = tpu.matmul %19, %21, %cst_14 {dimension_numbers = #tpu.dot_dimension_numbers<[2], [2], [1], [1], [0, 0, 0, 1, 1, 1], [0], [0]>} : vector<4x8x8xf32>, vector<4x8x8xf32>, vector<4x8x8xf32> -> vector<4x8x8xf32>
    "tpu.trace_stop"() : () -> ()
    %cst_15 = arith.constant dense<0xFF800000> : vector<4x8xf32>
    %25 = vector.multi_reduction <maximumf>, %24, %cst_15 [2] : vector<4x8x8xf32> to vector<4x8xf32>
    %26 = vector.shape_cast %25 : vector<4x8xf32> to vector<4x8x1xf32>
    %27 = vector.broadcast %26 : vector<4x8x1xf32> to vector<4x8x8xf32>
    %28 = arith.subf %24, %27 : vector<4x8x8xf32>
    %29 = math.exp %28 : vector<4x8x8xf32>
    %cst_16 = arith.constant dense<0.000000e+00> : vector<4x8xf32>
    %30 = vector.multi_reduction <add>, %29, %cst_16 [2] : vector<4x8x8xf32> to vector<4x8xf32>
    %31 = vector.shape_cast %30 : vector<4x8xf32> to vector<4x8x1xf32>
    %32 = tpu.reciprocal %31 {approx = true} : vector<4x8x1xf32> -> vector<4x8x1xf32>
    %33 = vector.broadcast %32 : vector<4x8x1xf32> to vector<4x8x8xf32>
    %34 = arith.mulf %29, %33 : vector<4x8x8xf32>
    "tpu.trace_start"() <{level = 10 : i32, message = "hqk,hkd->hqd"}> : () -> ()
    %cst_17 = arith.constant dense<0.000000e+00> : vector<4x8x8xf32>
    %35 = tpu.matmul %34, %23, %cst_17 {dimension_numbers = #tpu.dot_dimension_numbers<[2], [1], [1], [2], [0, 0, 0, 1, 1, 2], [0], [0]>} : vector<4x8x8xf32>, vector<4x8x8xf32>, vector<4x8x8xf32> -> vector<4x8x8xf32>
    "tpu.trace_stop"() : () -> ()
    %36 = tpu.transpose %35, [1, 0, 2] : vector<4x8x8xf32> -> vector<8x4x8xf32>
    %37 = vector.shape_cast %36 : vector<8x4x8xf32> to vector<8x32xf32>
    %c0_18 = arith.constant 0 : index
    %c0_19 = arith.constant 0 : index
    %38 = vector.load %arg4[%c0_18, %c0_19] : memref<32x32xf32, #tpu.memory_space<vmem>>, vector<32x32xf32>
    %cst_20 = arith.constant dense<0.000000e+00> : vector<8x32xf32>
    %39 = tpu.matmul %37, %38, %cst_20 {dimension_numbers = #tpu.dot_dimension_numbers<[1], [0], [0], [1], [0, 0, 1, 1], [], []>} : vector<8x32xf32>, vector<32x32xf32>, vector<8x32xf32> -> vector<8x32xf32>
    %40 = vector.broadcast %2 : vector<1x32xf32> to vector<8x32xf32>
    %41 = arith.addf %39, %40 : vector<8x32xf32>
    %42 = arith.addf %1, %41 : vector<8x32xf32>
    %cst_21 = arith.constant dense<0.000000e+00> : vector<8xf32>
    %43 = vector.multi_reduction <add>, %42, %cst_21 [1] : vector<8x32xf32> to vector<8xf32>
    %44 = vector.shape_cast %43 : vector<8xf32> to vector<8x1xf32>
    %cst_22 = arith.constant 3.200000e+01 : f32
    %45 = vector.broadcast %cst_22 : f32 to vector<8x1xf32>
    %46 = arith.divf %44, %45 : vector<8x1xf32>
    %47 = vector.broadcast %46 : vector<8x1xf32> to vector<8x32xf32>
    %48 = arith.subf %42, %47 : vector<8x32xf32>
    %49 = arith.mulf %48, %48 : vector<8x32xf32>
    %cst_23 = arith.constant dense<0.000000e+00> : vector<8xf32>
    %50 = vector.multi_reduction <add>, %49, %cst_23 [1] : vector<8x32xf32> to vector<8xf32>
    %51 = vector.shape_cast %50 : vector<8xf32> to vector<8x1xf32>
    %cst_24 = arith.constant 3.200000e+01 : f32
    %52 = vector.broadcast %cst_24 : f32 to vector<8x1xf32>
    %53 = arith.divf %51, %52 : vector<8x1xf32>
    %54 = vector.broadcast %46 : vector<8x1xf32> to vector<8x32xf32>
    %55 = arith.subf %42, %54 : vector<8x32xf32>
    %cst_25 = arith.constant 9.99999974E-6 : f32
    %56 = vector.broadcast %cst_25 : f32 to vector<8x1xf32>
    %57 = arith.addf %53, %56 : vector<8x1xf32>
    %58 = math.rsqrt %57 : vector<8x1xf32>
    %59 = vector.broadcast %58 : vector<8x1xf32> to vector<8x32xf32>
    %60 = arith.mulf %55, %59 : vector<8x32xf32>
    %61 = vector.broadcast %4 : vector<1x32xf32> to vector<8x32xf32>
    %62 = arith.mulf %60, %61 : vector<8x32xf32>
    %63 = vector.broadcast %5 : vector<1x32xf32> to vector<8x32xf32>
    %64 = arith.addf %62, %63 : vector<8x32xf32>
    %c0_26 = arith.constant 0 : index
    %c0_27 = arith.constant 0 : index
    %65 = vector.load %arg5[%c0_26, %c0_27] : memref<32x64xf32, #tpu.memory_space<vmem>>, vector<32x64xf32>
    %cst_28 = arith.constant dense<0.000000e+00> : vector<8x64xf32>
    %66 = tpu.matmul %64, %65, %cst_28 {dimension_numbers = #tpu.dot_dimension_numbers<[1], [0], [0], [1], [0, 0, 1, 1], [], []>} : vector<8x32xf32>, vector<32x64xf32>, vector<8x64xf32> -> vector<8x64xf32>
    %c0_29 = arith.constant 0 : index
    %c0_30 = arith.constant 0 : index
    %67 = vector.load %arg6[%c0_29, %c0_30] : memref<1x64xf32, #tpu.memory_space<vmem>>, vector<1x64xf32>
    %68 = vector.broadcast %67 : vector<1x64xf32> to vector<8x64xf32>
    %69 = arith.addf %66, %68 : vector<8x64xf32>
    %cst_31 = arith.constant 0.000000e+00 : f32
    %70 = vector.broadcast %cst_31 : f32 to vector<8x64xf32>
    %71 = arith.maximumf %69, %70 : vector<8x64xf32>
    %c0_32 = arith.constant 0 : index
    %c0_33 = arith.constant 0 : index
    %72 = vector.load %arg7[%c0_32, %c0_33] : memref<64x32xf32, #tpu.memory_space<vmem>>, vector<64x32xf32>
    %cst_34 = arith.constant dense<0.000000e+00> : vector<8x32xf32>
    %73 = tpu.matmul %71, %72, %cst_34 {dimension_numbers = #tpu.dot_dimension_numbers<[1], [0], [0], [1], [0, 0, 1, 1], [], []>} : vector<8x64xf32>, vector<64x32xf32>, vector<8x32xf32> -> vector<8x32xf32>
    %74 = vector.broadcast %3 : vector<1x32xf32> to vector<8x32xf32>
    %75 = arith.addf %73, %74 : vector<8x32xf32>
    %76 = arith.addf %64, %75 : vector<8x32xf32>
    %cst_35 = arith.constant dense<0.000000e+00> : vector<8xf32>
    %77 = vector.multi_reduction <add>, %76, %cst_35 [1] : vector<8x32xf32> to vector<8xf32>
    %78 = vector.shape_cast %77 : vector<8xf32> to vector<8x1xf32>
    %cst_36 = arith.constant 3.200000e+01 : f32
    %79 = vector.broadcast %cst_36 : f32 to vector<8x1xf32>
    %80 = arith.divf %78, %79 : vector<8x1xf32>
    %81 = vector.broadcast %80 : vector<8x1xf32> to vector<8x32xf32>
    %82 = arith.subf %76, %81 : vector<8x32xf32>
    %83 = arith.mulf %82, %82 : vector<8x32xf32>
    %cst_37 = arith.constant dense<0.000000e+00> : vector<8xf32>
    %84 = vector.multi_reduction <add>, %83, %cst_37 [1] : vector<8x32xf32> to vector<8xf32>
    %85 = vector.shape_cast %84 : vector<8xf32> to vector<8x1xf32>
    %cst_38 = arith.constant 3.200000e+01 : f32
    %86 = vector.broadcast %cst_38 : f32 to vector<8x1xf32>
    %87 = arith.divf %85, %86 : vector<8x1xf32>
    %88 = vector.broadcast %80 : vector<8x1xf32> to vector<8x32xf32>
    %89 = arith.subf %76, %88 : vector<8x32xf32>
    %cst_39 = arith.constant 9.99999974E-6 : f32
    %90 = vector.broadcast %cst_39 : f32 to vector<8x1xf32>
    %91 = arith.addf %87, %90 : vector<8x1xf32>
    %92 = math.rsqrt %91 : vector<8x1xf32>
    %93 = vector.broadcast %92 : vector<8x1xf32> to vector<8x32xf32>
    %94 = arith.mulf %89, %93 : vector<8x32xf32>
    %95 = vector.broadcast %6 : vector<1x32xf32> to vector<8x32xf32>
    %96 = arith.mulf %94, %95 : vector<8x32xf32>
    %97 = vector.broadcast %7 : vector<1x32xf32> to vector<8x32xf32>
    %98 = arith.addf %96, %97 : vector<8x32xf32>
    %c0_40 = arith.constant 0 : index
    %c0_41 = arith.constant 0 : index
    %c0_42 = arith.constant 0 : index
    %99 = vector.load %arg9[%c0_40, %c0_41, %c0_42] : memref<1x8x32xf32, #tpu.memory_space<vmem>>, vector<1x8x32xf32>
    %100 = vector.shape_cast %99 : vector<1x8x32xf32> to vector<8x32xf32>
    %101 = vector.shape_cast %98 : vector<8x32xf32> to vector<1x8x32xf32>
    tpu.vector_store %arg9[%c0_40, %c0_41, %c0_42], %101 {strides = array<i32>} : memref<1x8x32xf32, #tpu.memory_space<vmem>>, vector<1x8x32xf32>,
    return
  }
  func.func @transform_0(%arg0: i32) -> (i32, i32, i32) {
    %c0_i32 = arith.constant 0 : i32
    %c0_i32_0 = arith.constant 0 : i32
    %c0_i32_1 = arith.constant 0 : i32
    return %arg0, %c0_i32, %c0_i32_0 : i32, i32, i32
  }
  func.func @transform_1(%arg0: i32) -> (i32, i32) {
    %c0_i32 = arith.constant 0 : i32
    %c0_i32_0 = arith.constant 0 : i32
    %c0_i32_1 = arith.constant 0 : i32
    return %c0_i32, %c0_i32_0 : i32, i32
  }
  func.func @transform_2(%arg0: i32) -> (i32, i32) {
    %c0_i32 = arith.constant 0 : i32
    %c0_i32_0 = arith.constant 0 : i32
    %c0_i32_1 = arith.constant 0 : i32
    return %c0_i32, %c0_i32_0 : i32, i32
  }
  func.func @transform_3(%arg0: i32) -> (i32, i32) {
    %c0_i32 = arith.constant 0 : i32
    %c0_i32_0 = arith.constant 0 : i32
    %c0_i32_1 = arith.constant 0 : i32
    return %c0_i32, %c0_i32_0 : i32, i32
  }
  func.func @transform_4(%arg0: i32) -> (i32, i32) {
    %c0_i32 = arith.constant 0 : i32
    %c0_i32_0 = arith.constant 0 : i32
    %c0_i32_1 = arith.constant 0 : i32
    return %c0_i32, %c0_i32_0 : i32, i32
  }
  func.func @transform_5(%arg0: i32) -> (i32, i32) {
    %c0_i32 = arith.constant 0 : i32
    %c0_i32_0 = arith.constant 0 : i32
    %c0_i32_1 = arith.constant 0 : i32
    return %c0_i32, %c0_i32_0 : i32, i32
  }
  func.func @transform_6(%arg0: i32) -> (i32, i32) {
    %c0_i32 = arith.constant 0 : i32
    %c0_i32_0 = arith.constant 0 : i32
    %c0_i32_1 = arith.constant 0 : i32
    return %c0_i32, %c0_i32_0 : i32, i32
  }
  func.func @transform_7(%arg0: i32) -> (i32, i32) {
    %c0_i32 = arith.constant 0 : i32
    %c0_i32_0 = arith.constant 0 : i32
    %c0_i32_1 = arith.constant 0 : i32
    return %c0_i32, %c0_i32_0 : i32, i32
  }
  func.func @transform_8(%arg0: i32) -> (i32, i32, i32) {
    %c0_i32 = arith.constant 0 : i32
    %c0_i32_0 = arith.constant 0 : i32
    %c0_i32_1 = arith.constant 0 : i32
    return %arg0, %c0_i32, %c0_i32_0 : i32, i32, i32
  }
}

</mosaic_0001>

<bundles_post_ra>
// kernel: tpu_custom_call.1
= control target key start
LH: loop header
LB: loop body
LE: loop exit
PB: predicated region body
PF: predicated region fallthrough
CT: control target
= control target key end

     0   :  { %s2143_s0 = inlined_call_operand.hbm [shape: f32[2,8,32], index: 0, kind: input, shape index: {}]   ;;  %s2144_s1 = inlined_call_operand.vmem [shape: f32[32,96], index: 1, kind: input, shape index: {}]   ;;  %s2145_s2 = inlined_call_operand.vmem [shape: f32[1,96], index: 2, kind: input, shape index: {}]   ;;  %s2146_s3 = inlined_call_operand.vmem [shape: f32[32,32], index: 3, kind: input, shape index: {}]   ;;  %s2147_s4 = inlined_call_operand.vmem [shape: f32[32,64], index: 4, kind: input, shape index: {}]   ;;  %s2148_s5 = inlined_call_operand.vmem [shape: f32[1,64], index: 5, kind: input, shape index: {}]   ;;  %s2149_s6 = inlined_call_operand.vmem [shape: f32[64,32], index: 6, kind: input, shape index: {}]   ;;  %s2150_s7 = inlined_call_operand.hbm [shape: f32[6,32], index: 7, kind: input, shape index: {}]   ;;  %s2151_s8 = inlined_call_operand.hbm [shape: f32[2,8,32], index: 8, kind: output, shape index: {}]  }
   0x1   :  { %2152 = sst [smem:[#allocation12_spill]] %s2150_s7 }
   0x2   :  { %13 = vsyncpa [#allocation3], 0 }
   0x3   :  { %15 = vsyncpa [#allocation3 + $0x1], 0 }
   0x4   :  { %16 = vsyncpa [#allocation6], 0 }
   0x5   :  { %17 = vsyncpa [#allocation4], 0 }
   0x6   :  { %19 = vsyncpa [#allocation4 + $0x1], 0  ;;  %s1696_s27 = smov 0   ;;  %s1698_s28 = smov 0  }
   0x7   :  { %s1700_s29 = smov 0   ;;  %s1702_s30 = smov 0  }
   0x8 LB: > { %s1717_s9 = sadd.s32 4294967295, %s1637_s30   ;;  %s1369_s10 = sadd.s32 4294967294, %s1637_s30   ;;  %s1637_s30 = sphi %s1702_s30, %s2165_s30   ;;  %s1633_s29 = sphi %s1700_s29, %s2164_s29   ;;  %s1629_s28 = sphi %s1698_s28, %s2163_s28   ;;  %s1625_s27 = sphi %s1696_s27, %s2162_s27  }
   0x9   : > { %p45_p0 = scmp.ne.s32.totalorder %s1629_s28, %s1625_s27  ;;  %p46_p1 = scmp.eq.s32.totalorder %s1717_s9, 0 }
   0xa   : > { %p216_p2 = scmp.eq.s32.totalorder %s1717_s9, 1  ;;  %p222_p3 = scmp.eq.s32.totalorder %s1369_s10, 1 }
   0xb   : > { %p1726_p4 = por %p46_p1, %p45_p0  ;;  %p1370_p5 = scmp.ge.s32.totalorder %s1637_s30, 1 }
   0xc   : > { %p1731_p6 = por %p222_p3, %p45_p0  ;;  %p229_p7 = scmp.lt.s32.totalorder %s1637_s30, 3 }
   0xd   : > { %s2155_s7 = sld [smem:[#allocation12_spill]]  ;;  %s1639_s17 = smov [#allocation5]  }
   0xe   : > { %p1739_p8 = pnand %p1370_p5, %p229_p7  ;;  %s261_s18 = sshll.u32 %s1639_s17, 4  ;;  %s262_s18 = int_to_ptr.vmem [resolvable:$true] %s261_s18 }
   0xf   : > { %s1749_s19 = sadd.s32 1, %s1637_s30   ;;  %s32_s20 = sadd.s32 1, %s1633_s29 }
  0x10   : > { %p1407_p10 = pneg %p1739_p8  ;;  %s29_s21 = ssub.s32 %s1637_s30, %s1749_s19 }
  0x11   : > { %p30_p12 = scmp.eq.s32.totalorder %s29_s21, 0  ;;  %p39_p13 = scmp.ne.s32.totalorder %s1633_s29, %s1629_s28 }
  0x12   : > { %p1408_p11 = pnand %p1407_p10, %p46_p1  ;;  %p40_p0 = scmp.eq.s32.totalorder %s1637_s30, 0 }
  0x13   : > { %s259_s15 = sshll.u32 %s2155_s7, 4  ;;  %p1762_p3 = por %p216_p2, %p39_p13  ;;  %s260_s15 = int_to_ptr.hbm [resolvable:$true] %s259_s15 }
  0x14   : > { %1410 = dma.hbm_to_vmem [thread:$0]  (!%p1408_p11), %s260_s15, 128, %s262_s18, [#allocation6]  }
  0x15   : > { %s1758_s22 = scalar_select %p30_p12, %s1633_s29, %s32_s20  }
  0x16   : > { %p1420_p5 = scmp.lt.s32.totalorder %s1637_s30, 2  ;;  %s272_s24 = sand.u32 1, %s1633_s29  }
  0x17   : > { %2157 = sst [smem:[#allocation11_spill]] %s1758_s22  ;;  %s1374_s25 = sshll.u32 %s1637_s30, 3 }
  0x18   : > { %p41_p7 = por %p40_p0, %p39_p13  ;;  %s1373_s26 = sshll.u32 %s272_s24, 3 }
  0x19   : > { %s280_s14 = scalar_lea.hbm %s2143_s0, %s1374_s25  ;;  %s276_s17 = scalar_lea.vmem [#allocation2], %s1373_s26 }
  0x1a   : > { %s282_s15 = sshll.u32 %s280_s14, 4  ;;  %s284_s18 = sshll.u32 %s276_s17, 4  ;;  %s283_s15 = int_to_ptr.hbm [resolvable:$true] %s282_s15  ;;  %s285_s18 = int_to_ptr.vmem [resolvable:$true] %s284_s18 }
  0x1b   : > { %p1772_p10 = pnand %p1420_p5, %p41_p7  ;;  %s273_s21 = scalar_lea.sflag [#allocation3], %s272_s24 }
  0x1c   : > { %s1537_s7 = sshra.s32 %s283_s15, 4  ;;  %s1544_s26 = scalar_lea.hbm %s2143_s0, 16  ;;  %s1538_s7 = int_to_ptr.hbm [resolvable:$true] %s1537_s7 }
  0x1d   : > { %s1539_s22 = scalar_lea.hbm %s1538_s7, 8  ;;  %p1541_p11 = pneg %p1772_p10 }
  0x1e   : > { %p1540_p2 = scmp.ne.s32.totalorder %s1538_s7, %s1539_s22  ;;  %p1545_p0 = scmp.lt.s32.totalorder %s1538_s7, %s2143_s0 }
  0x1f   : > { %p1546_p5 = scmp.lt.s32.totalorder %s1544_s26, %s1539_s22 }
  0x20   : > { %p1542_p12 = pnand %p1541_p11, %p1540_p2 }
  0x21   : > { %p1547_p7 = por %p1546_p5, %p1545_p0 }
  0x22   : > { %p1543_p13 = pneg %p1542_p12 }
  0x24   : > { %p1548_p9 = pnand %p1547_p7, %p1543_p13 }
  0x26   : > { %1551 = shalt.err (!%p1548_p9)
}
  0x27   : > { %1414 = dma.hbm_to_vmem [thread:$0]  (!%p1772_p10), %s283_s15, 128, %s285_s18, %s273_s21  }
  0x28   : > { %293 = sbr.rel (%p1739_p8) target bundleno = 2056 (0x808), region = 52  ;;  %s1789_s24 = sand.u32 (!%p1739_p8), 1, %s1629_s28  }
  0x29   : > { %s1376_s17 = sshll.u32 (!%p1739_p8), %s1789_s24, 3  ;;  %s296_s25 = scalar_lea.sflag (!%p1739_p8), [#allocation3], %s1789_s24 }
  0x2a   : > { %s299_s7 = scalar_lea.vmem (!%p1739_p8), [#allocation2], %s1376_s17 }
  0x2d   : > { %1612 = dma.done.wait (%p1726_p4), %s296_s25, 128  }
  0x2e   : > { %1614 = vsyncadd (%p1726_p4), %s296_s25, 4294967168 }
  0x2f   : > { %1616 = dma.done.wait (%p46_p1), [#allocation6], 128  }
  0x30   : > { %1618 = vsyncadd (%p46_p1), [#allocation6], 4294967168  ;;  %v348_v0 = vld [vmem:[%s2144_s1 + $0x18] sm:$0xff]  ;;  %v347_v1 = vld [vmem:[%s2144_s1 + $0x10] sm:$0xff]  ;;  %vm353_vm0 = vcmask 261120   ;;  %s1640_s14 = smov 104  }
  0x31   : > { %369 = vmatpush.msra.mxu0 %v348_v0  ;;  %v346_v2 = vld [vmem:[%s2144_s1 + $0x8] sm:$0xff]  ;;  %v345_v3 = vld [vmem:[%s2144_s1] sm:$0xff]  ;;  %s1641_s25 = smov 120   ;;  %s1643_s16 = smov 112   ;;  %v1644_v15 = vmov 1983009808  }
  0x32   : > { %v1815_v4 = vld [vmem:[%s299_s7] sm:$0xff]  ;;  %s1642_s7 = smov 96   ;;  %v394_v16 = vunpack.c.l.s4 %v1644_v15  ;;  %vm389_vm1 = vcmask 1047556   ;;  %v1645_v24 = vmov 1934713408   ;;  %vm750_vm2 = vcmask 64512  }
  0x33   : > { %370 = vmatpush.msra.mxu0 %v347_v1  ;;  %v1477_v5 = vld [vmem:[%s2145_s2] ss:$0 sm:$0xff]  ;;  %v418_v25 = vunpack.c.l.s4 %v1645_v24  ;;  %s1646_s22 = smov 64   ;;  %s1647_s15 = smov 16   ;;  %vm1114_vm3 = vcmask 130048   ;;  %vm1116_vm4 = vcmask 195584  }
  0x34   : > { %v1838_v19 = vunpack.c.0.s8 %v394_v16  ;;  %s1648_s18 = smov 8   ;;  %s1649_s20 = smov 24   ;;  %vm1221_vm9 = vcmask 523264  }
  0x35   : > { %371 = vmatpush.msra.mxu0 %v346_v2  ;;  %v1846_v33 = vunpack.c.0.s8 %v418_v25 }
  0x37   : > { %372 = vmatpush.msra.mxu0 %v345_v3 }
  0x38   : > { %1379 = vmatmul.msk.f32.vlgmr.msra.gmra.mxu0 %vm353_vm0, %v1815_v4 }
  0xb5   : > { %v374_v6 = vpop.f32.mrf.mxu0 }
  0xb6   : > { %v1822_v7 = vadd.f32 %v1477_v5, %v374_v6 }
  0xb8   : > { %504 = vrot.lane.b32.xlu1 %v1822_v7, %s1640_s14  ;;  %500 = vrot.lane.b32.xlu0 %v1822_v7, %s1641_s25  ;;  %v377_v8 = vmul.f32 0.35355338, %v1822_v7 }
  0xba   : > { %v391_v27 = vrot.slane %v377_v8, 4 }
  0xc0   : > { %506 = vrot.lane.b32.xlu1 %v1822_v7, %s1642_s7  ;;  %502 = vrot.lane.b32.xlu0 %v1822_v7, %s1643_s16 }
  0xc8   : > { %379 = vrot.lane.b32.xlu1 %v377_v8, %s1641_s25 }
 0x12a   : > { %v1829_v9 = vpop.permute.xlu1 %504  ;;  %v1831_v10 = vpop.permute.xlu0 %500 }
 0x12b   : > { %512 = vrot.lane.b32.xlu0 %v1829_v9, %s1642_s7  ;;  %508 = vrot.lane.b32.xlu2 %v1831_v10, %s1642_s7 }
 0x132   : > { %v1835_v11 = vpop.permute.xlu0 %502  ;;  %v507_v14 = vpop.permute.xlu1 %506 }
 0x133   : > { %510 = vrot.lane.b32.xlu2 %v1835_v11, %s1642_s7  ;;  %385 = vrot.lane.b32.xlu0 %v377_v8, %s1640_s14  ;;  %v520_v18 = vrot.slane %v507_v14, 4 }
 0x13a   : > { %v380_v45 = vpop.permute.xlu1 %379 }
 0x13b   : > { %382 = vrot.lane.b32.xlu2 %v377_v8, %s1643_s16  ;;  %v403_v53 = vrot.slane %v380_v45, 4  ;;  %s1396_s16 = sshll.u32 %s1717_s9, 3  ;;  %s1274_s9 = scalar_lea.sflag [#allocation4], %s1789_s24 }
 0x185   : > { %v509_v12 = vpop.permute.xlu2 %508 }
 0x186   : > { %v532_v28 = vrot.slane %v509_v12, 4 }
 0x18d   : > { %v511_v13 = vpop.permute.xlu2 %510 }
 0x18e   : > { %v518_v17 = vrot.slane %v511_v13, 4  ;;  %v521_v21 = vsel %vm389_vm1, %v511_v13, %v520_v18 }
 0x18f   : > { %v529_v26 = vperm.slane %v521_v21, %v1838_v19 }
 0x190   : > { %v519_v22 = vsel %vm389_vm1, %v518_v17, %v507_v14 }
 0x191   : > { %v525_v29 = vperm.slane %v519_v22, %v1838_v19  ;;  %v556_v36 = vrot.slane %v529_v26, 4 }
 0x193   : > { %v544_v38 = vrot.slane %v525_v29, 4 }
 0x195   : > { %v383_v20 = vpop.permute.xlu2 %382 }
 0x196   : > { %v388_v23 = vrot.slane %v383_v20, 4  ;;  %v392_v30 = vsel %vm389_vm1, %v383_v20, %v391_v27 }
 0x197   : > { %v400_v39 = vperm.slane %v392_v30, %v1838_v19 }
 0x198   : > { %v390_v32 = vsel %vm389_vm1, %v388_v23, %v377_v8 }
 0x199   : > { %v396_v41 = vperm.slane %v390_v32, %v1838_v19  ;;  %v427_v55 = vrot.slane %v400_v39, 4 }
 0x19b   : > { %v415_v54 = vrot.slane %v396_v41, 4 }
 0x19d   : > { %v513_v31 = vpop.permute.xlu0 %512 }
 0x19e   : > { %v530_v34 = vrot.slane %v513_v31, 4  ;;  %v533_v35 = vsel %vm389_vm1, %v513_v31, %v532_v28 }
 0x19f   : > { %v541_v37 = vperm.slane %v533_v35, %v1838_v19 }
 0x1a0   : > { %v531_v40 = vsel %vm389_vm1, %v530_v34, %v509_v12 }
 0x1a1   : > { %v537_v42 = vperm.slane %v531_v40, %v1838_v19  ;;  %v554_v43 = vrot.slane %v541_v37, 4  ;;  %v557_v44 = vsel %vm389_vm1, %v541_v37, %v556_v36 }
 0x1a2   : > { %v565_v46 = vperm.slane %v557_v44, %v1846_v33 }
 0x1a3   : > { %v542_v47 = vrot.slane %v537_v42, 4  ;;  %v545_v48 = vsel %vm389_vm1, %v537_v42, %v544_v38  ;;  %v555_v49 = vsel %vm389_vm1, %v554_v43, %v529_v26 }
 0x1a4   : > { %v553_v50 = vperm.slane %v545_v48, %v1846_v33  ;;  %v561_v51 = vperm.slane %v555_v49, %v1846_v33  ;;  %v572_v52 = vrot.slane %v565_v46, 4 }
 0x1a5   : > { %v543_v56 = vsel %vm389_vm1, %v542_v47, %v525_v29  ;;  %v386_v57 = vpop.permute.xlu0 %385 }
 0x1a6   : > { %v549_v58 = vperm.slane %v543_v56, %v1846_v33  ;;  %v568_v59 = vrot.slane %v553_v50, 4  ;;  %v570_v60 = vrot.slane %v561_v51, 4  ;;  %v573_v61 = vsel %vm389_vm1, 0.0, %v572_v52 }
 0x1a7   : > { %v585_v62 = vsel %vm389_vm1, %v572_v52, %v561_v51  ;;  %v590_v63 = vrot.slane %v573_v61, 4  ;;  %v401_v0 = vrot.slane %v386_v57, 4  ;;  %v404_v1 = vsel %vm389_vm1, %v386_v57, %v403_v53 }
 0x1a8   : > { %v569_v2 = vsel %vm389_vm1, 0.0, %v568_v59  ;;  %v571_v3 = vsel %vm389_vm1, 0.0, %v570_v60  ;;  %v589_v5 = vperm.slane %v585_v62, %v1838_v19  ;;  %v412_v6 = vperm.slane %v404_v1, %v1838_v19 }
 0x1a9   : > { %v579_v8 = vrot.slane %v569_v2, 4  ;;  %v402_v12 = vsel %vm389_vm1, %v401_v0, %v380_v45  ;;  %v566_v13 = vrot.slane %v549_v58, 4  ;;  %v574_v14 = vsel %vm389_vm1, %v568_v59, %v549_v58 }
 0x1aa   : > { %v408_v15 = vperm.slane %v402_v12, %v1838_v19  ;;  %v425_v16 = vrot.slane %v412_v6, 4  ;;  %v428_v17 = vsel %vm389_vm1, %v412_v6, %v427_v55  ;;  %v578_v18 = vperm.slane %v574_v14, %v1838_v19 }
 0x1ab   : > { %v436_v20 = vperm.slane %v428_v17, %v1846_v33  ;;  %v567_v21 = vsel %vm389_vm1, 0.0, %v566_v13  ;;  %v591_v22 = vsel %vm389_vm1, %v590_v63, %v571_v3  ;;  %v610_v23 = vrot.slane %v589_v5, 4 }
 0x1ac   : > { %v413_v24 = vrot.slane %v408_v15, 4  ;;  %v416_v25 = vsel %vm389_vm1, %v408_v15, %v415_v54  ;;  %v426_v26 = vsel %vm389_vm1, %v425_v16, %v400_v39  ;;  %v580_v27 = vsel %vm389_vm1, %v579_v8, %v567_v21 }
 0x1ad   : > { %v424_v28 = vperm.slane %v416_v25, %v1846_v33  ;;  %v432_v29 = vperm.slane %v426_v26, %v1846_v33  ;;  %v443_v30 = vrot.slane %v436_v20, 4  ;;  %v584_v31 = vperm.slane %v580_v27, %v1838_v19 }
 0x1ae   : > { %v414_v32 = vsel %vm389_vm1, %v413_v24, %v396_v41  ;;  %v595_v34 = vperm.slane %v591_v22, %v1838_v19  ;;  %v598_v35 = vrot.slane %v578_v18, 4 }
 0x1af   : > { %v420_v36 = vperm.slane %v414_v32, %v1846_v33  ;;  %v439_v37 = vrot.slane %v424_v28, 4  ;;  %v441_v38 = vrot.slane %v432_v29, 4  ;;  %v444_v39 = vsel %vm389_vm1, 0.0, %v443_v30 }
 0x1b0   : > { %v456_v40 = vsel %vm389_vm1, %v443_v30, %v432_v29  ;;  %v461_v42 = vrot.slane %v444_v39, 4  ;;  %v599_v43 = vsel %vm389_vm1, %v584_v31, %v598_v35  ;;  %v611_v44 = vsel %vm389_vm1, %v595_v34, %v610_v23 }
 0x1b1   : > { %v437_v45 = vrot.slane %v420_v36, 4  ;;  %v440_v41 = vsel %vm389_vm1, 0.0, %v439_v37  ;;  %v442_v46 = vsel %vm389_vm1, 0.0, %v441_v38  ;;  %v460_v47 = vperm.slane %v456_v40, %v1838_v19 }
 0x1b2   : > { %v450_v48 = vrot.slane %v440_v41, 4  ;;  %v607_v49 = vperm.slane %v599_v43, %v1846_v33  ;;  %v619_v50 = vperm.slane %v611_v44, %v1846_v33  ;;  %v596_v51 = vrot.slane %v584_v31, 4 }
 0x1b3   : > { %v608_v52 = vrot.slane %v595_v34, 4  ;;  %v438_v53 = vsel %vm389_vm1, 0.0, %v437_v45  ;;  %v445_v54 = vsel %vm389_vm1, %v439_v37, %v420_v36  ;;  %v462_v55 = vsel %vm389_vm1, %v461_v42, %v442_v46 }
 0x1b4   : > { %v624_v56 = vrot.slane %v619_v50, 4  ;;  %v597_v57 = vsel %vm389_vm1, %v596_v51, %v578_v18  ;;  %v626_v58 = vrot.slane %v607_v49, 4  ;;  %v449_v59 = vperm.slane %v445_v54, %v1838_v19 }
 0x1b5   : > { %v603_v60 = vperm.slane %v597_v57, %v1846_v33  ;;  %v609_v61 = vsel %vm389_vm1, %v608_v52, %v589_v5  ;;  %v451_v62 = vsel %vm389_vm1, %v450_v48, %v438_v53  ;;  %v466_v63 = vperm.slane %v462_v55, %v1838_v19 }
 0x1b6   : > { %v625_v0 = vsel %vm389_vm1, %v624_v56, %v607_v49  ;;  %v615_v1 = vperm.slane %v609_v61, %v1846_v33  ;;  %v455_v2 = vperm.slane %v451_v62, %v1838_v19  ;;  %v469_v6 = vrot.slane %v449_v59, 4 }
 0x1b7   : > { %1384 = vmatpush.xpose.msk.msra.mxu3 %vm750_vm2, %v625_v0  ;;  %v622_v3 = vrot.slane %v603_v60, 4  ;;  %v481_v8 = vrot.slane %v460_v47, 4  ;;  %v479_v12 = vrot.slane %v466_v63, 4  ;;  %v627_v14 = vsel %vm389_vm1, %v619_v50, %v626_v58 }
 0x1b8   : > { %v620_v13 = vrot.slane %v615_v1, 4  ;;  %v467_v5 = vrot.slane %v455_v2, 4  ;;  %v470_v16 = vsel %vm389_vm1, %v455_v2, %v469_v6  ;;  %v1467_v44 = vpack.i.bf16 %v1831_v10, %v1822_v7 }
 0x1b9   : > { %v623_v15 = vsel %vm389_vm1, %v615_v1, %v622_v3  ;;  %v482_v17 = vsel %vm389_vm1, %v466_v63, %v481_v8  ;;  %v480_v18 = vsel %vm389_vm1, %v479_v12, %v460_v47  ;;  %v478_v21 = vperm.slane %v470_v16, %v1846_v33 }
 0x1ba   : > { %v621_v20 = vsel %vm389_vm1, %v620_v13, %v603_v60  ;;  %1382 = vmatpush.xpose.msk.msra.mxu2 %vm750_vm2, %v623_v15  ;;  %v490_v22 = vperm.slane %v482_v17, %v1846_v33  ;;  %v468_v23 = vsel %vm389_vm1, %v467_v5, %v449_v59  ;;  %v486_v25 = vperm.slane %v480_v18, %v1846_v33 }
 0x1bb   : > { %1380 = vmatpush.xpose.msk.msra.mxu1 %vm750_vm2, %v621_v20  ;;  %v474_v24 = vperm.slane %v468_v23, %v1846_v33  ;;  %v497_v32 = vrot.slane %v478_v21, 4  ;;  %v1472_v45 = vpack.i.bf16 %v1829_v9, %v1835_v11 }
 0x1bc   : > { %v495_v26 = vrot.slane %v490_v22, 4  ;;  %v491_v27 = vrot.slane %v486_v25, 4 }
 0x1bd   : > { %v493_v28 = vrot.slane %v474_v24, 4  ;;  %v498_v34 = vsel %vm389_vm1, %v490_v22, %v497_v32 }
 0x1be   : > { %v496_v29 = vsel %vm389_vm1, %v495_v26, %v478_v21  ;;  %v492_v30 = vsel %vm389_vm1, %v491_v27, %v474_v24 }
 0x1bf   : > { %1386 = vmatpush.xpose.msk.msrb.mxu1 %vm750_vm2, %v627_v14  ;;  %1385 = vmatmul.msk.f32.vlgmr.msra.gmra.mxu3 %vm750_vm2, %v496_v29  ;;  %v494_v31 = vsel %vm389_vm1, %v486_v25, %v493_v28 }
 0x1c0   : > { %1381 = vmatmul.msk.f32.vlgmr.msra.gmra.mxu1 %vm750_vm2, %v492_v30  ;;  %1383 = vmatmul.msk.f32.vlgmr.msra.gmra.mxu2 %vm750_vm2, %v494_v31 }
 0x1c8   : > { %1387 = vmatmul.msk.f32.vlgmr.msrb.gmra.mxu1 %vm750_vm2, %v498_v34 }
 0x23d   : > { %v774_v35 = vpop.f32.mrf.mxu1 }
 0x23e   : > { %v855_v36 = vsel %vm750_vm2, %v774_v35, -inf }
 0x23f   : > { %856 = vmax.xlane.f32.xlu2 %v855_v36 }
 0x242   : > { %v826_v37 = vpop.f32.mrf.mxu3 }
 0x243   : > { %v861_v38 = vsel %vm750_vm2, %v826_v37, -inf  ;;  %v800_v39 = vpop.f32.mrf.mxu2 }
 0x244   : > { %862 = vmax.xlane.f32.xlu1 %v861_v38  ;;  %v858_v40 = vsel %vm750_vm2, %v800_v39, -inf }
 0x245   : > { %v852_v42 = vpop.f32.mrf.mxu1  ;;  %859 = vmax.xlane.f32.xlu0 %v858_v40 }
 0x246   : > { %v864_v43 = vsel %vm750_vm2, %v852_v42, -inf }
 0x247   : > { %865 = vmax.xlane.f32.xlu2 %v864_v43 }
 0x25d   : > { %1468 = vrot.lane.b32.xlu1 %v1467_v44, %s1646_s22 }
 0x25f   : > { %1473 = vrot.lane.b32.xlu2 %v1472_v45, %s1646_s22 }
 0x2b2   : > { %v857_v41 = vpop.xlane.xlu2 %856 }
 0x2b3   : > { %v867_v46 = vsub.f32 %v774_v35, %v857_v41 }
 0x2b5   : > { %v871_v47 = vmul.f32 1.442695, %v867_v46 }
 0x2b7   : > { %1485 = vpow2.f32 %v871_v47  ;;  %v863_v48 = vpop.xlane.xlu1 %862 }
 0x2b8   : > { %v869_v49 = vsub.f32 %v826_v37, %v863_v48  ;;  %v860_v51 = vpop.xlane.xlu0 %859 }
 0x2b9   : > { %v868_v7 = vsub.f32 %v800_v39, %v860_v51 }
 0x2ba   : > { %v875_v50 = vmul.f32 1.442695, %v869_v49  ;;  %v866_v52 = vpop.xlane.xlu2 %865 }
 0x2bb   : > { %v870_v53 = vsub.f32 %v852_v42, %v866_v52  ;;  %v873_v11 = vmul.f32 1.442695, %v868_v7 }
 0x2bc   : > { %1487 = vpow2.f32 %v875_v50 }
 0x2bd   : > { %v1938_v54 = vpop.eup %1485  ;;  %v877_v10 = vmul.f32 1.442695, %v870_v53 }
 0x2be   : > { %v879_v9 = vsel %vm750_vm2, %v1938_v54, 0.0 }
 0x2bf   : > { %1489 = vpow2.f32 %v877_v10  ;;  %880 = vadd.xlane.f32.xlu0 %v879_v9 }
 0x2c0   : > { %1491 = vpow2.f32 %v873_v11 }
 0x2c2   : > { %v1942_v55 = vpop.eup %1487  ;;  %v1474_v59 = vpop.permute.xlu2 %1473 }
 0x2c3   : > { %v885_v57 = vsel %vm750_vm2, %v1942_v55, 0.0  ;;  %v1476_v61 = vunpack.i.h.bf16 %v1474_v59  ;;  %v1475_v62 = vunpack.i.l.bf16 %v1474_v59 }
 0x2c5   : > { %v1944_v56 = vpop.eup %1489  ;;  %v652_v1 = vrot.slane %v1476_v61, 4  ;;  %v640_v2 = vrot.slane %v1475_v62, 4 }
 0x2c6   : > { %v888_v58 = vsel %vm750_vm2, %v1944_v56, 0.0  ;;  %v1950_v60 = vpop.eup %1491 }
 0x2c7   : > { %886 = vadd.xlane.f32.xlu0 %v885_v57  ;;  %889 = vadd.xlane.f32.xlu1 %v888_v58  ;;  %v882_v63 = vsel %vm750_vm2, %v1950_v60, 0.0 }
 0x2cf   : > { %v1469_v0 = vpop.permute.xlu1 %1468  ;;  %883 = vadd.xlane.f32.xlu0 %v882_v63 }
 0x2d0   : > { %v1471_v3 = vunpack.i.h.bf16 %v1469_v0  ;;  %v1470_v6 = vunpack.i.l.bf16 %v1469_v0 }
 0x2d2   : > { %v654_v8 = vrot.slane %v1471_v3, 4  ;;  %v641_v12 = vsel %vm389_vm1, %v640_v2, %v1470_v6  ;;  %v642_v13 = vrot.slane %v1470_v6, 4  ;;  %v653_v14 = vsel %vm389_vm1, %v652_v1, %v1471_v3 }
 0x2d3   : > { %v647_v5 = vperm.slane %v641_v12, %v1838_v19  ;;  %v659_v15 = vperm.slane %v653_v14, %v1838_v19 }
 0x2d4   : > { %v643_v16 = vsel %vm389_vm1, %v1475_v62, %v642_v13  ;;  %v655_v17 = vsel %vm389_vm1, %v1476_v61, %v654_v8 }
 0x2d5   : > { %v651_v18 = vperm.slane %v643_v16, %v1838_v19  ;;  %v663_v20 = vperm.slane %v655_v17, %v1838_v19  ;;  %v664_v21 = vrot.slane %v659_v15, 4  ;;  %v666_v22 = vrot.slane %v647_v5, 4 }
 0x2d7   : > { %v665_v23 = vsel %vm389_vm1, %v664_v21, %v647_v5  ;;  %v667_v24 = vsel %vm389_vm1, %v659_v15, %v666_v22  ;;  %v676_v25 = vrot.slane %v663_v20, 4  ;;  %v678_v26 = vrot.slane %v651_v18, 4 }
 0x2d8   : > { %v671_v27 = vperm.slane %v665_v23, %v1846_v33  ;;  %v675_v28 = vperm.slane %v667_v24, %v1846_v33 }
 0x2d9   : > { %v677_v29 = vsel %vm389_vm1, %v676_v25, %v651_v18  ;;  %v679_v30 = vsel %vm389_vm1, %v663_v20, %v678_v26 }
 0x2da   : > { %v683_v31 = vperm.slane %v677_v29, %v1846_v33  ;;  %v687_v32 = vperm.slane %v679_v30, %v1846_v33  ;;  %v688_v34 = vrot.slane %v671_v27, 4  ;;  %v690_v35 = vrot.slane %v675_v28, 4 }
 0x2dc   : > { %v691_v36 = vsel %vm389_vm1, 0.0, %v690_v35  ;;  %v692_v37 = vrot.slane %v683_v31, 4  ;;  %v694_v38 = vrot.slane %v687_v32, 4  ;;  %v696_v40 = vsel %vm389_vm1, %v690_v35, %v671_v27 }
 0x2dd   : > { %v701_v39 = vrot.slane %v691_v36, 4  ;;  %v689_v42 = vsel %vm389_vm1, 0.0, %v688_v34  ;;  %v700_v44 = vperm.slane %v696_v40, %v1838_v19 }
 0x2de   : > { %v695_v43 = vsel %vm389_vm1, 0.0, %v694_v38  ;;  %v707_v45 = vsel %vm389_vm1, %v694_v38, %v683_v31  ;;  %v693_v48 = vsel %vm389_vm1, 0.0, %v692_v37 }
 0x2df   : > { %v712_v41 = vrot.slane %v695_v43, 4  ;;  %v702_v46 = vsel %vm389_vm1, %v701_v39, %v689_v42  ;;  %v711_v47 = vperm.slane %v707_v45, %v1838_v19  ;;  %v720_v50 = vrot.slane %v700_v44, 4 }
 0x2e0   : > { %v706_v49 = vperm.slane %v702_v46, %v1838_v19 }
 0x2e1   : > { %v713_v51 = vsel %vm389_vm1, %v712_v41, %v693_v48  ;;  %v732_v52 = vrot.slane %v711_v47, 4 }
 0x2e2   : > { %v717_v53 = vperm.slane %v713_v51, %v1838_v19  ;;  %v718_v7 = vrot.slane %v706_v49, 4  ;;  %v721_v10 = vsel %vm389_vm1, %v706_v49, %v720_v50 }
 0x2e3   : > { %v729_v9 = vperm.slane %v721_v10, %v1846_v33 }
 0x2e4   : > { %v719_v11 = vsel %vm389_vm1, %v718_v7, %v700_v44  ;;  %v730_v57 = vrot.slane %v717_v53, 4  ;;  %v733_v58 = vsel %vm389_vm1, %v717_v53, %v732_v52 }
 0x2e5   : > { %v725_v59 = vperm.slane %v719_v11, %v1846_v33  ;;  %v741_v61 = vperm.slane %v733_v58, %v1846_v33  ;;  %v748_v63 = vrot.slane %v729_v9, 4 }
 0x2e6   : > { %v731_v62 = vsel %vm389_vm1, %v730_v57, %v711_v47 }
 0x2e7   : > { %v737_v0 = vperm.slane %v731_v62, %v1846_v33  ;;  %v744_v1 = vrot.slane %v725_v59, 4  ;;  %v746_v2 = vrot.slane %v741_v61, 4  ;;  %v749_v12 = vsel %vm389_vm1, %v741_v61, %v748_v63 }
 0x2e9   : > { %v745_v3 = vsel %vm389_vm1, %v737_v0, %v744_v1  ;;  %v747_v6 = vsel %vm389_vm1, %v746_v2, %v729_v9  ;;  %v742_v8 = vrot.slane %v737_v0, 4 }
 0x2ea   : > { %940 = vmatpush.msrb.mxu3 %v745_v3  ;;  %963 = vmatpush.msra.mxu1 %v747_v6 }
 0x2eb   : > { %v743_v13 = vsel %vm389_vm1, %v742_v8, %v725_v59 }
 0x2ec   : > { %986 = vmatpush.msrb.mxu1 %v749_v12  ;;  %917 = vmatpush.msrb.mxu2 %v743_v13 }
 0x332   : > { %v881_v14 = vpop.xlane.xlu0 %880 }
 0x333   : > { %1493 = vrcp.f32 %v881_v14 }
 0x339   : > { %v1494_v5 = vpop.eup %1493 }
 0x33a   : > { %v887_v15 = vpop.xlane.xlu0 %886  ;;  %v895_v16 = vmul.f32 %v1494_v5, %v1938_v54  ;;  %v890_v17 = vpop.xlane.xlu1 %889 }
 0x33b   : > { %1495 = vrcp.f32 %v887_v15 }
 0x33c   : > { %1388 = vmatmul.msk.f32.vlgmr.msrb.gmra.mxu2 %vm750_vm2, %v895_v16  ;;  %1497 = vrcp.f32 %v890_v17 }
 0x341   : > { %v1496_v18 = vpop.eup %1495 }
 0x342   : > { %v897_v20 = vmul.f32 %v1496_v18, %v1942_v55  ;;  %v884_v21 = vpop.xlane.xlu0 %883  ;;  %v1498_v22 = vpop.eup %1497 }
 0x343   : > { %1499 = vrcp.f32 %v884_v21  ;;  %v898_v24 = vmul.f32 %v1498_v22, %v1944_v56 }
 0x344   : > { %1390 = vmatmul.msk.f32.vlgmr.msra.gmra.mxu1 %vm750_vm2, %v897_v20 }
 0x349   : > { %v1500_v23 = vpop.eup %1499 }
 0x34a   : > { %v896_v25 = vmul.f32 %v1500_v23, %v1950_v60 }
 0x34c   : > { %1389 = vmatmul.msk.f32.vlgmr.msrb.gmra.mxu3 %vm750_vm2, %v896_v25  ;;  %1391 = vmatmul.msk.f32.vlgmr.msrb.gmra.mxu1 %vm750_vm2, %v898_v24 }
 0x3bf   : > { %v919_v26 = vpop.f32.mrf.mxu2 }
 0x3c0   : > { %v993_v28 = vrot.slane %v919_v26, 4 }
 0x3c1   : > { %v965_v54 = vpop.f32.mrf.mxu1 }
 0x3c2   : > { %v991_v27 = vrot.slane %v965_v54, 4  ;;  %v994_v30 = vsel %vm389_vm1, %v965_v54, %v993_v28 }
 0x3c3   : > { %v1002_v56 = vperm.slane %v994_v30, %v1838_v19  ;;  %v1118_v30 = vld [vmem:[%s2146_s3] sm:$0xff] }
 0x3c4   : > { %v992_v55 = vsel %vm389_vm1, %v991_v27, %v919_v26 }
 0x3c5   : > { %v998_v31 = vperm.slane %v992_v55, %v1838_v19  ;;  %v1029_v39 = vrot.slane %v1002_v56, 4  ;;  %v1120_v55 = vld [vmem:[%s2146_s3 + $0x10] sm:$0xff] }
 0x3c7   : > { %v1017_v36 = vrot.slane %v998_v31, 4 }
 0x3c9   : > { %v988_v29 = vpop.f32.mrf.mxu1 }
 0x3ca   : > { %v1003_v32 = vrot.slane %v988_v29, 4 }
 0x3cf   : > { %v942_v34 = vpop.f32.mrf.mxu3 }
 0x3d0   : > { %v1004_v60 = vsel %vm389_vm1, %v1003_v32, %v942_v34  ;;  %v1005_v35 = vrot.slane %v942_v34, 4 }
 0x3d1   : > { %v1010_v37 = vperm.slane %v1004_v60, %v1838_v19 }
 0x3d2   : > { %v1006_v38 = vsel %vm389_vm1, %v988_v29, %v1005_v35  ;;  %v1119_v29 = vld [vmem:[%s2146_s3 + $0x8] sm:$0xff] }
 0x3d3   : > { %v1014_v40 = vperm.slane %v1006_v38, %v1838_v19  ;;  %v1015_v42 = vrot.slane %v1010_v37, 4  ;;  %v1018_v43 = vsel %vm389_vm1, %v1010_v37, %v1017_v36  ;;  %v1478_v36 = vld [vmem:[#allocation5] ss:$0 sm:$0xff] }
 0x3d4   : > { %v1026_v44 = vperm.slane %v1018_v43, %v1846_v33 }
 0x3d5   : > { %v1016_v45 = vsel %vm389_vm1, %v1015_v42, %v998_v31  ;;  %v1027_v41 = vrot.slane %v1014_v40, 4  ;;  %v1030_v46 = vsel %vm389_vm1, %v1014_v40, %v1029_v39  ;;  %v1650_v42 = vmov 32.0  }
 0x3d6   : > { %v1022_v47 = vperm.slane %v1016_v45, %v1846_v33  ;;  %v1038_v48 = vperm.slane %v1030_v46, %v1846_v33  ;;  %v1041_v49 = vrot.slane %v1026_v44, 4  ;;  %1501 = vrcp.f32 %v1650_v42 }
 0x3d7   : > { %v1028_v50 = vsel %vm389_vm1, %v1027_v41, %v1002_v56 }
 0x3d8   : > { %v1034_v51 = vperm.slane %v1028_v50, %v1846_v33  ;;  %v1039_v52 = vrot.slane %v1022_v47, 4  ;;  %v1042_v53 = vsel %vm389_vm1, 0.0, %v1041_v49  ;;  %v1045_v7 = vrot.slane %v1038_v48, 4 }
 0x3d9   : > { %v1047_v10 = vsel %vm389_vm1, %v1041_v49, %v1022_v47  ;;  %v1052_v9 = vrot.slane %v1042_v53, 4  ;;  %v1182_v53 = vld [vmem:[%s2147_s4 + $0x10] sm:$0xff] }
 0x3da   : > { %v1040_v11 = vsel %vm389_vm1, 0.0, %v1039_v52  ;;  %v1043_v57 = vrot.slane %v1034_v51, 4  ;;  %v1046_v58 = vsel %vm389_vm1, 0.0, %v1045_v7  ;;  %v1051_v59 = vperm.slane %v1047_v10, %v1838_v19  ;;  %v1183_v52 = vld [vmem:[%s2147_s4 + $0x18] sm:$0xff]  ;;  %v1180_v10 = vld [vmem:[%s2147_s4] sm:$0xff] }
 0x3db   : > { %v1063_v61 = vrot.slane %v1046_v58, 4  ;;  %v1053_v62 = vsel %vm389_vm1, %v1052_v9, %v1040_v11  ;;  %v1058_v63 = vsel %vm389_vm1, %v1045_v7, %v1034_v51  ;;  %1203 = vmatpush.msra.mxu3 %v1183_v52  ;;  %v1181_v7 = vld [vmem:[%s2147_s4 + $0x8] sm:$0xff]  ;;  %v1219_v9 = vld [vmem:[%s2149_s6 + $0x38] sm:$0xff]  ;;  %v1218_v11 = vld [vmem:[%s2149_s6 + $0x30] sm:$0xff] }
 0x3dc   : > { %v1044_v0 = vsel %vm389_vm1, 0.0, %v1043_v57  ;;  %v1057_v1 = vperm.slane %v1053_v62, %v1838_v19  ;;  %v1062_v2 = vperm.slane %v1058_v63, %v1838_v19  ;;  %v1071_v3 = vrot.slane %v1051_v59, 4  ;;  %v1502_v43 = vpop.eup %1501  ;;  %1233 = vmatpush.msrb.mxu0 %v1219_v9  ;;  %v1217_v57 = vld [vmem:[%s2149_s6 + $0x28] sm:$0xff]  ;;  %v1215_v63 = vld [vmem:[%s2149_s6 + $0x18] sm:$0xff] }
 0x3dd   : > { %v1064_v6 = vsel %vm389_vm1, %v1063_v61, %v1044_v0  ;;  %v1151_v44 = vmul.f32 32.0, %v1502_v43  ;;  %vm1155_vm5 = vweird.f32 %v1502_v43  ;;  %1204 = vmatpush.msra.mxu3 %v1182_v53  ;;  %v1216_v61 = vld [vmem:[%s2149_s6 + $0x20] sm:$0xff] }
 0x3de   : > { %v1068_v8 = vperm.slane %v1064_v6, %v1838_v19  ;;  %v1083_v12 = vrot.slane %v1062_v2, 4  ;;  %v1069_v13 = vrot.slane %v1057_v1, 4  ;;  %v1072_v14 = vsel %vm389_vm1, %v1057_v1, %v1071_v3  ;;  %1234 = vmatpush.msrb.mxu0 %v1218_v11 }
 0x3df   : > { %v1080_v21 = vperm.slane %v1072_v14, %v1846_v33  ;;  %v1152_v45 = vsub.f32 1.0, %v1151_v44  ;;  %1205 = vmatpush.msra.mxu3 %v1181_v7 }
 0x3e0   : > { %v1084_v5 = vsel %vm389_vm1, %v1068_v8, %v1083_v12  ;;  %v1070_v15 = vsel %vm389_vm1, %v1069_v13, %v1051_v59  ;;  %v1081_v16 = vrot.slane %v1068_v8, 4  ;;  %1235 = vmatpush.msrb.mxu0 %v1217_v57  ;;  %v1479_v12 = vld [vmem:[#allocation5 + $0x2] ss:$0 sm:$0xff] }
 0x3e1   : > { %v1092_v17 = vperm.slane %v1084_v5, %v1846_v33  ;;  %v1076_v18 = vperm.slane %v1070_v15, %v1846_v33  ;;  %v1099_v27 = vrot.slane %v1080_v21, 4  ;;  %v1153_v41 = vmul.f32 %v1502_v43, %v1152_v45  ;;  %1206 = vmatpush.msra.mxu3 %v1180_v10  ;;  %v1480_v5 = vld [vmem:[#allocation5 + $0x3] ss:$0 sm:$0xff] }
 0x3e2   : > { %v1082_v20 = vsel %vm389_vm1, %v1081_v16, %v1062_v2  ;;  %1236 = vmatpush.msrb.mxu0 %v1216_v61 }
 0x3e3   : > { %v1097_v22 = vrot.slane %v1092_v17, 4  ;;  %v1088_v19 = vperm.slane %v1082_v20, %v1846_v33  ;;  %v1095_v23 = vrot.slane %v1076_v18, 4  ;;  %v1100_v28 = vsel %vm389_vm1, %v1092_v17, %v1099_v27  ;;  %v1121_v33 = vld [vmem:[%s2146_s3 + $0x18] sm:$0xff]  ;;  %v1214_v17 = vld [vmem:[%s2149_s6 + $0x10] sm:$0xff]  ;;  %v1212_v20 = vld [vmem:[%s2149_s6] sm:$0xff] }
 0x3e4   : > { %1138 = vmatpush.msra.mxu2 %v1121_v33  ;;  %v1154_v46 = vadd.f32 %v1502_v43, %v1153_v41  ;;  %1237 = vmatpush.msrb.mxu0 %v1215_v63 }
 0x3e5   : > { %v1098_v24 = vsel %vm389_vm1, %v1097_v22, %v1080_v21  ;;  %v1093_v25 = vrot.slane %v1088_v19, 4  ;;  %v1096_v54 = vsel %vm389_vm1, %v1088_v19, %v1095_v23  ;;  %v1481_v21 = vld [vmem:[%s2148_s5] ss:$0 sm:$0xff] }
 0x3e6   : > { %1106 = vrot.lane.b32.xlu0 %v1098_v24, %s1647_s15  ;;  %1102 = vrot.lane.b32.xlu2 %v1096_v54, %s1648_s18  ;;  %v2058_v47 = vsel %vm1155_vm5, %v1502_v43, %v1154_v46  ;;  %v1482_v24 = vld [vmem:[#allocation5 + $0x1] ss:$0 sm:$0xff]  ;;  %s1284_s18 = scalar_lea.hbm %s2151_s8, %s1396_s16  ;;  %v1484_v43 = vld [vmem:[#allocation5 + $0x5] ss:$0 sm:$0xff] }
 0x3e7   : > { %v1094_v26 = vsel %vm389_vm1, %v1093_v25, %v1076_v18  ;;  %1139 = vmatpush.msra.mxu2 %v1120_v55  ;;  %1238 = vmatpush.msrb.mxu0 %v1214_v17  ;;  %v1213_v18 = vld [vmem:[%s2149_s6 + $0x8] sm:$0xff]  ;;  %s1288_s11 = sshll.u32 %s1284_s18, 4  ;;  %s1289_s11 = int_to_ptr.hbm [resolvable:$true] %s1288_s11 }
 0x3e8   : > { %s1581_s10 = sshra.s32 %s1289_s11, 4  ;;  %s1582_s10 = int_to_ptr.hbm [resolvable:$true] %s1581_s10 }
 0x3e9   : > { %1140 = vmatpush.msra.mxu2 %v1119_v29  ;;  %1239 = vmatpush.msrb.mxu0 %v1213_v18  ;;  %s1583_s26 = scalar_lea.hbm %s1582_s10, 8  ;;  %p1588_p9 = scmp.lt.s32.totalorder %s1582_s10, %s2151_s8 }
 0x3ea   : > { %p1584_p1 = scmp.ne.s32.totalorder %s1582_s10, %s1583_s26 }
 0x3eb   : > { %1141 = vmatpush.msra.mxu2 %v1118_v30  ;;  %1240 = vmatpush.msrb.mxu0 %v1212_v20 }
 0x3ec   : > { %p1585_p4 = pnand %p1584_p1, %p1762_p3 }
 0x3ee   : > { %1110 = vrot.lane.b32.xlu2 %v1100_v28, %s1649_s20  ;;  %s337_s20 = scalar_lea.vmem [#allocation7], %s1376_s17  ;;  %p1586_p8 = pneg %p1585_p4 }
 0x3ef   : > { %s1286_s21 = sshll.u32 %s337_s20, 4  ;;  %s1587_s17 = scalar_lea.hbm %s2151_s8, 16  ;;  %s1287_s21 = int_to_ptr.vmem [resolvable:$true] %s1286_s21 }
 0x3f0   : > { %p1589_p10 = scmp.lt.s32.totalorder %s1587_s17, %s1583_s26 }
 0x3f2   : > { %p1590_p2 = por %p1589_p10, %p1588_p9 }
 0x3f4   : > { %p1591_p11 = pnand %p1590_p2, %p1586_p8 }
 0x440   : > { %v1103_v31 = vpop.permute.xlu2 %1102 }
 0x441   : > { %v1113_v32 = vsel %vm750_vm2, %v1094_v26, %v1103_v31 }
 0x448   : > { %v1111_v34 = vpop.permute.xlu2 %1110 }
 0x458   : > { %v1107_v56 = vpop.permute.xlu0 %1106 }
 0x459   : > { %v1115_v60 = vsel %vm1114_vm3, %v1113_v32, %v1107_v56 }
 0x45a   : > { %v1117_v35 = vsel %vm1116_vm4, %v1115_v60, %v1111_v34 }
 0x45b   : > { %1392 = vmatmul.msk.f32.vlgmr.msra.gmra.mxu2 %vm353_vm0, %v1117_v35 }
 0x4de   : > { %v1143_v37 = vpop.f32.mrf.mxu2 }
 0x4df   : > { %v1144_v38 = vadd.f32 %v1478_v36, %v1143_v37 }
 0x4e1   : > { %v1146_v39 = vadd.f32 %v1144_v38, %v1815_v4 }
 0x4e3   : > { %v1147_v40 = vsel %vm353_vm0, %v1146_v39, 0.0 }
 0x4e4   : > { %1148 = vadd.xlane.f32.xlu2 %v1147_v40 }
 0x557   : > { %v1149_v48 = vpop.xlane.xlu2 %1148 }
 0x558   : > { %v1157_v49 = vmul.f32 %v2058_v47, %v1149_v48 }
 0x55a   : > { %v1158_v50 = vsub.f32 %v1146_v39, %v1157_v49  ;;  %v1483_v39 = vld [vmem:[#allocation5 + $0x4] ss:$0 sm:$0xff] }
 0x55c   : > { %v1159_v51 = vmul.f32 %v1158_v50, %v1158_v50 }
 0x55e   : > { %v1160_v4 = vsel %vm353_vm0, %v1159_v51, 0.0 }
 0x55f   : > { %1161 = vadd.xlane.f32.xlu0 %v1160_v4 }
 0x5d2   : > { %v1162_v58 = vpop.xlane.xlu0 %1161 }
 0x5d3   : > { %v1163_v59 = vmul.f32 %v1162_v58, %v2058_v47 }
 0x5d5   : > { %v1164_v62 = vadd.f32 1e-05, %v1163_v59 }
 0x5d7   : > { %1503 = vrsqrt.f32 %v1164_v62  ;;  %vm1171_vm7 = vweird.f32 %v1164_v62 }
 0x5dd   : > { %v1504_v0 = vpop.eup %1503 }
 0x5de   : > { %v1166_v1 = vmul.f32 %v1504_v0, %v1164_v62  ;;  %vm1172_vm6 = vweird.f32 %v1504_v0 }
 0x5df   : > { %vm1173_vm8 = vmor %vm1171_vm7, %vm1172_vm6 }
 0x5e0   : > { %v1167_v2 = vmul.f32 %v1504_v0, %v1166_v1 }
 0x5e2   : > { %v1168_v3 = vmul.f32 0.5, %v1167_v2 }
 0x5e4   : > { %v1169_v6 = vsub.f32 1.5, %v1168_v3 }
 0x5e6   : > { %v1170_v8 = vmul.f32 %v1504_v0, %v1169_v6 }
 0x5e8   : > { %v1174_v13 = vsel %vm1173_vm8, %v1504_v0, %v1170_v8 }
 0x5e9   : > { %v1175_v14 = vmul.f32 %v1174_v13, %v1158_v50 }
 0x5eb   : > { %v1177_v15 = vmul.f32 %v1479_v12, %v1175_v14 }
 0x5ed   : > { %v1179_v16 = vadd.f32 %v1480_v5, %v1177_v15 }
 0x5ef   : > { %1393 = vmatmul.msk.f32.vlgmr.msra.gmra.mxu3 %vm353_vm0, %v1179_v16 }
 0x672   : > { %v1208_v22 = vpop.f32.mrf.mxu3 }
 0x673   : > { %v1209_v19 = vadd.f32 %v1481_v21, %v1208_v22 }
 0x675   : > { %v1211_v23 = vmax.f32 %v1209_v19, 0.0 }
 0x677   : > { %1394 = vmatmul.msk.f32.vlgmr.msrb.gmra.mxu0 %vm1221_vm9, %v1211_v23 }
 0x6f4   : > { %v1242_v25 = vpop.f32.mrf.mxu0 }
 0x6f5   : > { %v1243_v54 = vadd.f32 %v1482_v24, %v1242_v25 }
 0x6f7   : > { %v1245_v26 = vadd.f32 %v1243_v54, %v1179_v16 }
 0x6f9   : > { %v1246_v27 = vsel %vm353_vm0, %v1245_v26, 0.0 }
 0x6fa   : > { %1247 = vadd.xlane.f32.xlu1 %v1246_v27 }
 0x76d   : > { %v1248_v28 = vpop.xlane.xlu1 %1247 }
 0x76e   : > { %v1249_v33 = vmul.f32 %v1248_v28, %v2058_v47 }
 0x770   : > { %v1250_v55 = vsub.f32 %v1245_v26, %v1249_v33 }
 0x772   : > { %v1251_v29 = vmul.f32 %v1250_v55, %v1250_v55 }
 0x774   : > { %v1252_v30 = vsel %vm353_vm0, %v1251_v29, 0.0 }
 0x775   : > { %1253 = vadd.xlane.f32.xlu1 %v1252_v30 }
 0x7e8   : > { %v1254_v31 = vpop.xlane.xlu1 %1253 }
 0x7e9   : > { %v1255_v32 = vmul.f32 %v1254_v31, %v2058_v47 }
 0x7eb   : > { %v1256_v56 = vadd.f32 1e-05, %v1255_v32 }
 0x7ed   : > { %1505 = vrsqrt.f32 %v1256_v56  ;;  %vm1263_vm11 = vweird.f32 %v1256_v56 }
 0x7f3   : > { %v1506_v34 = vpop.eup %1505 }
 0x7f4   : > { %v1258_v60 = vmul.f32 %v1506_v34, %v1256_v56  ;;  %vm1264_vm10 = vweird.f32 %v1506_v34 }
 0x7f5   : > { %vm1265_vm12 = vmor %vm1263_vm11, %vm1264_vm10 }
 0x7f6   : > { %v1259_v35 = vmul.f32 %v1506_v34, %v1258_v60 }
 0x7f8   : > { %v1260_v36 = vmul.f32 0.5, %v1259_v35 }
 0x7fa   : > { %v1261_v37 = vsub.f32 1.5, %v1260_v36 }
 0x7fc   : > { %v1262_v38 = vmul.f32 %v1506_v34, %v1261_v37 }
 0x7fe   : > { %v1266_v40 = vsel %vm1265_vm12, %v1506_v34, %v1262_v38 }
 0x7ff   : > { %v1267_v42 = vmul.f32 %v1266_v40, %v1250_v55 }
 0x801   : > { %v1269_v44 = vmul.f32 %v1483_v39, %v1267_v42 }
 0x803   : > { %v1271_v45 = vadd.f32 %v1484_v43, %v1269_v44 }
 0x805   : > { %1272 = vst.msk [vmem:[%s337_s20] sm:$0xff] %vm353_vm0, %v1271_v45 }
 0x806   : > { %1594 = shalt.err (!%p1591_p11)
}
 0x807   : > { %1405 = dma.vmem_to_hbm [thread:$0]  (%p1762_p3), %s1287_s21, 128, %s1289_s11, %s1274_s9  }
 0x808 PF: > { %s1300_s24 = sand.u32 1, %s1625_s27   ;;  %p2160_p12 = scmp.ge.s32.totalorder %s1637_s30, 2 }
 0x809   : > { %s1301_s16 = scalar_lea.sflag [#allocation4], %s1300_s24 }
 0x80a   : > { %p1416_p13 = pnand %p2160_p12, %p1731_p6 }
 0x80c   : > { %p1417_p0 = pneg %p1416_p13 }
 0x80e   : > { %1620 = dma.done.wait (%p1417_p0), %s1301_s16, 128  }
 0x80f   : > { %1622 = vsyncadd (%p1417_p0), %s1301_s16, 4294967168  ;;  %s2161_s22 = sld [smem:[#allocation11_spill]]  ;;  %p22_p5 = scmp.ge.s32.totalorder %s1749_s19, 4  }
 0x810   : > { %s2162_s27 = smov %s1629_s28  ;;  %s2163_s28 = smov %s1633_s29 }
 0x811   : > { %s2165_s30 = smov %s1749_s19  ;;  %24 = sbr.rel (!%p22_p5) target bundleno = 8 (0x8), region = 101 }
 0x815   : > { %s2164_s29 = smov %s2161_s22 }
 0x816   :  { %1307 = vsyncpa [#allocation3], 1 }
 0x817   :  { %1309 = vsyncpa [#allocation3 + $0x1], 1 }
 0x818   :  { %1310 = vsyncpa [#allocation6], 1 }
 0x819   :  { %1311 = vsyncpa [#allocation4], 1 }
 0x81a   :  { %1313 = vsyncpa [#allocation4 + $0x1], 1 }

</bundles_post_ra>
